<compile_context>
chip_gen: v6e
topology: v6e:2x2x1
jax: 0.10.0
libtpu: 0.0.40
codegen_flags: <defaults>
</compile_context>

<pallas_src>
import functools

import jax
import jax.numpy as jnp
from jax.experimental import pallas as pl
from jax.experimental.pallas import tpu as pltpu


def _round_up(v, m):
    return ((v + m - 1) // m) * m


def _int_pow(q, n: int):
    """q**n for a small static non-negative integer n (squaring on the VPU)."""
    if n == 0:
        return jnp.ones_like(q)
    result = None
    base = q
    e = n
    while e > 0:
        if e & 1:
            result = base if result is None else result * base
        e >>= 1
        if e:
            base = base * base
    return result


def _asl_kernel(x_ref, y_ref, out_ref, *, gamma_neg, gamma_pos, clip, eps,
                from_logits, binary_fast, valid_rows, block_rows):
    x = x_ref[...].astype(jnp.float32)
    y = y_ref[...].astype(jnp.float32)

    if from_logits:
        # sigmoid(x) = 0.5*(tanh(x/2)+1): single EUP op, no multi-op divide.
        x = 0.5 * (jnp.tanh(0.5 * x) + 1.0)

    xs_neg = 1.0 - x
    if clip is not None and clip > 0:
        xs_neg = jnp.minimum(xs_neg + clip, 1.0)   # (xs_neg + clip).clamp(max=1)

    if binary_fast:
        # Valid for hard {0,1} labels:
        #   y*log(xs_pos) + (1-y)*log(xs_neg) == log(select(y, xs_pos, xs_neg))
        #   (1-pt)**(gp*y+gn*(1-y))           == select(y, q**gp, q**gn)
        # -> one log per element, static integer powers on the VPU.
        is_pos = y > 0.5
        p = jnp.where(is_pos, x, xs_neg)
        loss = jnp.log(jnp.maximum(p, eps))
        if gamma_neg > 0 or gamma_pos > 0:
            q = 1.0 - p
            w = jnp.where(is_pos,
                          _int_pow(q, int(gamma_pos)),
                          _int_pow(q, int(gamma_neg)))
            loss = loss * w
    else:
        # General path (soft labels / non-integer gammas): mirrors the
        # PyTorch forward exactly.
        los_pos = y * jnp.log(jnp.maximum(x, eps))
        los_neg = (1.0 - y) * jnp.log(jnp.maximum(xs_neg, eps))
        loss = los_pos + los_neg
        if gamma_neg > 0 or gamma_pos > 0:
            pt = x * y + xs_neg * (1.0 - y)
            one_sided_gamma = gamma_pos * y + gamma_neg * (1.0 - y)
            base = 1.0 - pt
            w = jnp.power(base, one_sided_gamma)
            # torch defines pow(0, 0) == 1; an exp(g*log(0)) lowering gives NaN.
            w = jnp.where((base <= 0.0) & (one_sided_gamma <= 0.0), 1.0, w)
            loss = loss * w

    # Mask the ragged tail tile (static no-op when rows divide evenly).
    if valid_rows % block_rows != 0:
        row = jax.lax.broadcasted_iota(jnp.int32, loss.shape, 0)
        rem = valid_rows - pl.program_id(0) * block_rows
        loss = jnp.where(row < rem, loss, 0.0)

    # Per-tile partial sum; no cross-step carry, so the grid axis is "parallel".
    out_ref[0, 0] = jnp.sum(loss)


def _choose_block_rows(rows, cols):
    # ~1 MiB per input per pipeline buffer keeps the mem-bound roofline
    # (~85%+ at 512-1024 rows x 128 lanes) while leaving headroom for the
    # whole-block f32 intermediates on v5e (16 MiB scoped default) and v7x
    # (64 MiB physical VMEM / TC).
    target_bytes = 1 << 20
    br = max(1, target_bytes // (cols * 4))
    if rows >= 64:
        # keep >= 2 tiles so the DMA pipeline and v7x 2-TC sharding engage
        br = min(br, pl.cdiv(rows, 2))
    if br >= rows:
        return rows                          # full-dim block: always legal
    return max(32, (br // 32) * 32)          # 32-sublane align: f32/bf16/int8 safe


def asymmetric_loss(x, y, *, gamma_neg=4, gamma_pos=1, clip=0.05, eps=1e-8,
                    from_logits=False, assume_binary_labels=True,
                    block_rows=None):
    """-sum of asymmetric focal loss.

    x: probabilities (like the PyTorch module's x_sigmoid), or raw logits if
       from_logits=True (sigmoid is fused into the kernel).
    y: multi-label binarized targets, same shape as x (f32/bf16/int8/int/bool).
    assume_binary_labels: enables the fast {0,1}-label math; set False for
       soft/smoothed labels.
    """
    assert x.shape == y.shape
    if x.ndim != 2:
        x = x.reshape(-1, x.shape[-1])      # contiguous reshape: no HBM copy
        y = y.reshape(-1, y.shape[-1])
    if y.dtype == jnp.bool_:
        y = y.astype(jnp.int8)
    rows, cols = x.shape

    if block_rows is None:
        block_rows = _choose_block_rows(rows, cols)
    else:
        block_rows = int(block_rows)
        block_rows = rows if block_rows >= rows else max(32, _round_up(block_rows, 32))
    num_tiles = pl.cdiv(rows, block_rows)

    binary_fast = bool(
        assume_binary_labels
        and float(gamma_neg) == int(gamma_neg) and gamma_neg >= 0
        and float(gamma_pos) == int(gamma_pos) and gamma_pos >= 0)

    kernel = functools.partial(
        _asl_kernel,
        gamma_neg=float(gamma_neg),
        gamma_pos=float(gamma_pos),
        clip=clip,
        eps=float(eps),
        from_logits=bool(from_logits),
        binary_fast=binary_fast,
        valid_rows=int(rows),
        block_rows=int(block_rows),
    )

    # VMEM budget: 2 inputs x 2 pipeline buffers + ~8 block-sized f32
    # elementwise intermediates + slack; clamp to a generation-safe range.
    x_blk = block_rows * cols * x.dtype.itemsize
    y_blk = block_rows * cols * y.dtype.itemsize
    interm = 8 * block_rows * cols * 4
    vmem_limit = int(min(max(2 * (x_blk + y_blk) + interm + (2 << 20),
                             16 << 20), 64 << 20))

    partials = pl.pallas_call(
        kernel,
        out_shape=jax.ShapeDtypeStruct((num_tiles, 1), jnp.float32),
        grid_spec=pltpu.PrefetchScalarGridSpec(
            num_scalar_prefetch=0,
            grid=(num_tiles,),
            in_specs=[
                pl.BlockSpec((block_rows, cols), lambda i: (i, 0)),
                pl.BlockSpec((block_rows, cols), lambda i: (i, 0)),
            ],
            out_specs=pl.BlockSpec((1, 1), lambda i: (i, 0),
                                   memory_space=pltpu.MemorySpace.SMEM),
        ),
        compiler_params=pltpu.CompilerParams(
            dimension_semantics=("parallel",),   # per-tile partials, no carry
            vmem_limit_bytes=vmem_limit,
        ),
    )(x, y)

    return -jnp.sum(partials)


def asymmetric_loss_ref(x_sigmoid, y, gamma_neg=4, gamma_pos=1, clip=0.05,
                        eps=1e-8):
    # Pure-JAX reference mirroring the PyTorch forward.
    x_sigmoid = x_sigmoid.astype(jnp.float32)
    y = y.astype(jnp.float32)
    xs_pos = x_sigmoid
    xs_neg = 1.0 - x_sigmoid
    if clip is not None and clip > 0:
        xs_neg = jnp.minimum(xs_neg + clip, 1.0)
    los_pos = y * jnp.log(jnp.maximum(xs_pos, eps))
    los_neg = (1.0 - y) * jnp.log(jnp.maximum(xs_neg, eps))
    loss = los_pos + los_neg
    pt = xs_pos * y + xs_neg * (1.0 - y)
    one_sided_gamma = gamma_pos * y + gamma_neg * (1.0 - y)
    one_sided_w = jnp.power(1.0 - pt, one_sided_gamma)
    loss = loss * one_sided_w
    return -jnp.sum(loss)


if __name__ == "__main__":
    key = jax.random.PRNGKey(0)
    k1, k2, k3, k4, k5 = jax.random.split(key, 5)

    # Small multi-label classification shapes; C=80 exercises lane padding.
    B, C = 8, 80
    logits = jax.random.normal(k1, (B, C), dtype=jnp.float32)
    x_sigmoid = jax.nn.sigmoid(logits)
    y = (jax.random.uniform(k2, (B, C)) < 0.3).astype(jnp.float32)
    ref = asymmetric_loss_ref(x_sigmoid, y)

    # 1) Module-equivalent call: probabilities in, fast binary-label math.
    out = jax.block_until_ready(asymmetric_loss(x_sigmoid, y))
    assert jnp.allclose(out, ref, rtol=1e-4, atol=1e-3), (out, ref)

    # 2) Fused-sigmoid path: raw logits in.
    out_logits = jax.block_until_ready(asymmetric_loss(logits, y,
                                                       from_logits=True))
    assert jnp.allclose(out_logits, ref, rtol=1e-4, atol=1e-3), (out_logits, ref)

    # 3) General (soft-label-safe) path with hard labels matches too.
    out_gen = jax.block_until_ready(
        asymmetric_loss(x_sigmoid, y, assume_binary_labels=False))
    assert jnp.allclose(out_gen, ref, rtol=1e-4, atol=1e-3), (out_gen, ref)

    # 4) General path with genuinely soft labels.
    y_soft = jax.random.uniform(k3, (B, C), dtype=jnp.float32)
    ref_soft = asymmetric_loss_ref(x_sigmoid, y_soft)
    out_soft = jax.block_until_ready(
        asymmetric_loss(x_sigmoid, y_soft, assume_binary_labels=False))
    assert jnp.allclose(out_soft, ref_soft, rtol=1e-4, atol=1e-3), (out_soft, ref_soft)

    # 5) Multi-tile grid with a ragged tail (in-kernel row mask, no pad copy).
    B2 = 300
    logits2 = jax.random.normal(k4, (B2, C), dtype=jnp.float32)
    x2 = jax.nn.sigmoid(logits2)
    y2 = (jax.random.uniform(k5, (B2, C)) < 0.3).astype(jnp.float32)
    ref2 = asymmetric_loss_ref(x2, y2)
    out2 = jax.block_until_ready(asymmetric_loss(x2, y2))
    assert jnp.allclose(out2, ref2, rtol=1e-4, atol=1e-2), (out2, ref2)

    # 6) Narrow dtypes straight into the kernel: bf16 activations, int8 labels.
    B3, C3 = 64, 128
    x3_bf16 = jax.nn.sigmoid(jax.random.normal(k1, (B3, C3))).astype(jnp.bfloat16)
    y3_i8 = (jax.random.uniform(k2, (B3, C3)) < 0.3).astype(jnp.int8)
    ref3 = asymmetric_loss_ref(x3_bf16.astype(jnp.float32),
                               y3_i8.astype(jnp.float32))
    out3 = jax.block_until_ready(asymmetric_loss(x3_bf16, y3_i8))
    assert jnp.allclose(out3, ref3, rtol=1e-4, atol=1e-2), (out3, ref3)

    # TODO(synk): torch.set_grad_enabled / disable_torch_grad_focal_loss is a
    # backward-pass concern with no forward-pass Pallas equivalent.
    print("KERNEL_OK")
</pallas_src>

<mosaic_0001>
module attributes {stable_mosaic.version = 11 : i64} {
  func.func @_asl_kernel(%arg0: i32, %arg1: memref<8x80xf32, #tpu.memory_space<vmem>>, %arg2: memref<8x80xf32, #tpu.memory_space<vmem>>, %arg3: memref<1x1xf32, #tpu.memory_space<smem>>) attributes {dimension_semantics = [#tpu.dimension_semantics<parallel>], iteration_bounds = array<i64: 1>, scalar_prefetch = 0 : i64, scratch_operands = 0 : i64, tpu.core_type = #tpu.core_type<tc>, window_params = [{transform_indices = @transform_0, window_bounds = array<i64: 8, 80>}, {transform_indices = @transform_1, window_bounds = array<i64: 8, 80>}, {transform_indices = @transform_2, window_bounds = array<i64: 1, 1>}]} {
    %c0 = arith.constant 0 : index
    %c0_0 = arith.constant 0 : index
    %0 = vector.load %arg1[%c0, %c0_0] : memref<8x80xf32, #tpu.memory_space<vmem>>, vector<8x80xf32>
    %c0_1 = arith.constant 0 : index
    %c0_2 = arith.constant 0 : index
    %1 = vector.load %arg2[%c0_1, %c0_2] : memref<8x80xf32, #tpu.memory_space<vmem>>, vector<8x80xf32>
    %cst = arith.constant 1.000000e+00 : f32
    %2 = vector.broadcast %cst : f32 to vector<8x80xf32>
    %3 = arith.subf %2, %0 : vector<8x80xf32>
    %cst_3 = arith.constant 5.000000e-02 : f32
    %4 = vector.broadcast %cst_3 : f32 to vector<8x80xf32>
    %5 = arith.addf %3, %4 : vector<8x80xf32>
    %cst_4 = arith.constant 1.000000e+00 : f32
    %6 = vector.broadcast %cst_4 : f32 to vector<8x80xf32>
    %7 = arith.minimumf %5, %6 : vector<8x80xf32>
    %cst_5 = arith.constant 5.000000e-01 : f32
    %8 = vector.broadcast %cst_5 : f32 to vector<8x80xf32>
    %9 = arith.cmpf ogt, %1, %8 : vector<8x80xf32>
    %10 = arith.select %9, %0, %7 : vector<8x80xi1>, vector<8x80xf32>
    %cst_6 = arith.constant 9.99999993E-9 : f32
    %11 = vector.broadcast %cst_6 : f32 to vector<8x80xf32>
    %12 = arith.maximumf %10, %11 : vector<8x80xf32>
    %13 = math.log %12 : vector<8x80xf32>
    %cst_7 = arith.constant 1.000000e+00 : f32
    %14 = vector.broadcast %cst_7 : f32 to vector<8x80xf32>
    %15 = arith.subf %14, %10 : vector<8x80xf32>
    %16 = arith.mulf %15, %15 : vector<8x80xf32>
    %17 = arith.mulf %16, %16 : vector<8x80xf32>
    %18 = arith.select %9, %15, %17 : vector<8x80xi1>, vector<8x80xf32>
    %19 = arith.mulf %13, %18 : vector<8x80xf32>
    %20 = vector.shape_cast %19 : vector<8x80xf32> to vector<1x8x80xf32>
    %cst_8 = arith.constant dense<0.000000e+00> : vector<1xf32>
    %21 = vector.multi_reduction <add>, %20, %cst_8 [1, 2] : vector<1x8x80xf32> to vector<1xf32>
    %22 = vector.shape_cast %21 : vector<1xf32> to vector<1x1x1xf32>
    %23 = vector.extract %22[0, 0, 0] : f32 from vector<1x1x1xf32>
    %c0_9 = arith.constant 0 : index
    %c0_10 = arith.constant 0 : index
    %24 = memref.load %arg3[%c0_9, %c0_10] : memref<1x1xf32, #tpu.memory_space<smem>>
    memref.store %23, %arg3[%c0_9, %c0_10] : memref<1x1xf32, #tpu.memory_space<smem>>
    return
  }
  func.func @transform_0(%arg0: i32) -> (i32, i32) {
    %c0_i32 = arith.constant 0 : i32
    %c0_i32_0 = arith.constant 0 : i32
    return %arg0, %c0_i32 : i32, i32
  }
  func.func @transform_1(%arg0: i32) -> (i32, i32) {
    %c0_i32 = arith.constant 0 : i32
    %c0_i32_0 = arith.constant 0 : i32
    return %arg0, %c0_i32 : i32, i32
  }
  func.func @transform_2(%arg0: i32) -> (i32, i32) {
    %c0_i32 = arith.constant 0 : i32
    %c0_i32_0 = arith.constant 0 : i32
    return %arg0, %c0_i32 : i32, i32
  }
}

</mosaic_0001>

<bundles_post_ra>
// kernel: tpu_custom_call.1
= control target key start
LH: loop header
LB: loop body
LE: loop exit
PB: predicated region body
PF: predicated region fallthrough
CT: control target
= control target key end

     0   :  { %7 = vsyncpa [#allocation3], 0  ;;  %s167_s0 = inlined_call_operand.hbm [shape: f32[8,80], index: 0, kind: input, shape index: {}]   ;;  %s168_s1 = inlined_call_operand.hbm [shape: f32[8,80], index: 1, kind: input, shape index: {}]   ;;  %s169_s2 = inlined_call_operand.hbm [shape: f32[1,1], index: 2, kind: output, shape index: {}]  }
   0x1   :  { %8 = vsyncpa [#allocation6], 0 }
   0x2   :  { %9 = vsyncpa [#allocation4], 0  ;;  %s140_s9 = smov [#allocation2]   ;;  %s141_s11 = smov [#allocation5]  }
   0x3   :  { %s16_s10 = sshll.u32 %s140_s9, 4  ;;  %s26_s12 = sshll.u32 %s141_s11, 4  ;;  %s17_s10 = int_to_ptr.vmem [resolvable:$true] %s16_s10  ;;  %s27_s12 = int_to_ptr.vmem [resolvable:$true] %s26_s12 }
   0x4   :  { %s94_s13 = scalar_lea.vmem %s17_s10, 128  ;;  %p99_p1 = scmp.lt.s32.totalorder %s17_s10, %s17_s10 }
   0x5   :  { %p95_p0 = scmp.ne.s32.totalorder %s17_s10, %s94_s13  ;;  %p100_p2 = scmp.lt.s32.totalorder %s94_s13, %s94_s13 }
   0x7   :  { %p101_p3 = por %p100_p2, %p99_p1 }
   0x9   :  { %p102_p4 = pnand %p101_p3, %p95_p0 }
   0xb   :  { %105 = shalt.err (!%p102_p4)
}
   0xc   :  { %19 = dma.hbm_to_vmem [thread:$0]  %s167_s0, 128, %s17_s10, [#allocation3]  }
   0xd   :  { %s114_s16 = scalar_lea.vmem %s27_s12, 128  ;;  %p119_p6 = scmp.lt.s32.totalorder %s27_s12, %s27_s12 }
   0xe   :  { %p115_p5 = scmp.ne.s32.totalorder %s27_s12, %s114_s16  ;;  %p120_p7 = scmp.lt.s32.totalorder %s114_s16, %s114_s16 }
  0x10   :  { %p121_p8 = por %p120_p7, %p119_p6 }
  0x12   :  { %p122_p9 = pnand %p121_p8, %p115_p5 }
  0x14   :  { %125 = shalt.err (!%p122_p9)
}
  0x15   :  { %29 = dma.hbm_to_vmem [thread:$0]  %s168_s1, 128, %s27_s12, [#allocation6]  }
  0x16   :  { %134 = dma.done.wait [#allocation3], 128  }
  0x17   :  { %135 = vsyncadd [#allocation3], 4294967168 }
  0x18   :  { %136 = dma.done.wait [#allocation6], 128  }
  0x19   :  { %137 = vsyncadd [#allocation6], 4294967168  ;;  %v36_v0 = vld [vmem:[#allocation2] sm:$0xff]  ;;  %v37_v1 = vld [vmem:[#allocation5] sm:$0xff]  ;;  %vm51_vm1 = vcmask 654336   ;;  %s142_s1 = smov [#allocation7]  }
  0x1a   :  { %v38_v2 = vsub.f32 1.0, %v36_v0  ;;  %vm41_vm0 = vcmp.gt.f32.partialorder %v37_v1, 0.5 }
  0x1c   :  { %v39_v3 = vadd.f32 0.05, %v38_v2 }
  0x1e   :  { %v40_v4 = vmin.f32 %v39_v3, 1.0 }
  0x20   :  { %v42_v5 = vsel %vm41_vm0, %v36_v0, %v40_v4 }
  0x21   :  { %v43_v6 = vmax.f32 %v42_v5, 1e-08  ;;  %v46_v7 = vsub.f32 1.0, %v42_v5 }
  0x23   :  { %84 = vlog2.f32 %v43_v6  ;;  %v47_v8 = vmul.f32 %v46_v7, %v46_v7 }
  0x25   :  { %v48_v9 = vmul.f32 %v47_v8, %v47_v8 }
  0x27   :  { %v49_v11 = vsel %vm41_vm0, %v46_v7, %v48_v9 }
  0x30   :  { %v85_v10 = vpop.eup %84 }
  0x31   :  { %v45_v12 = vmul.f32 0.6931472, %v85_v10 }
  0x33   :  { %v50_v13 = vmul.f32 %v49_v11, %v45_v12 }
  0x35   :  { %v52_v14 = vsel %vm51_vm1, %v50_v13, 0.0 }
  0x36   :  { %53 = vadd.xlane.f32.xlu0 %v52_v14 }
  0xbf   :  { %v54_v15 = vpop.xlane.xlu0 %53 }
  0xc0   :  { %v55_v16 = vrot.slane %v54_v15, 4 }
  0xc2   :  { %v56_v17 = vadd.f32 %v55_v16, %v54_v15 }
  0xc4   :  { %v57_v18 = vrot.slane %v56_v17, 2 }
  0xc6   :  { %v58_v19 = vadd.f32 %v57_v18, %v56_v17 }
  0xc8   :  { %v59_v20 = vrot.slane %v58_v19, 1 }
  0xca   :  { %v60_v21 = vadd.f32 %v59_v20, %v58_v19 }
  0xcc   :  { %79 = vpush %v60_v21 }
  0xfd   :  { %s80_s0 = spop %79 }
  0xfe   :  { %63 = sst [smem:[#allocation7]] %s80_s0 }
  0xff   :  { %71 = dma.smem_to_hbm %s142_s1, 16, %s169_s2, [#allocation4]  }
 0x100   :  { %138 = dma.done.wait [#allocation4], 16  }
 0x101   :  { %139 = vsyncadd [#allocation4], 4294967280 }
 0x102   :  { %75 = sfence }
 0x103   :  { %76 = vsyncpa [#allocation3], 1 }
 0x104   :  { %77 = vsyncpa [#allocation6], 1 }
 0x105   :  { %78 = vsyncpa [#allocation4], 1 }

</bundles_post_ra>
